<compile_context>
chip_gen: v7x
topology: tpu7x:2x2x1
jax: 0.10.0
libtpu: 0.0.40
codegen_flags: <defaults>
</compile_context>

<pallas_src>
import functools

import jax
import jax.numpy as jnp
from jax.experimental import pallas as pl
from jax.experimental.pallas import tpu as pltpu


# --------------------------------------------------------------------------- kernel 1
def retention_head_kernel(x_ref, w_ref, b_ref, mask_ref, wn_ref, o_ref, *, head_dim, eps):
    """One grid step == one retention head.

    x_ref    : (S, D)        bf16   input (same block every head -> stays resident)
    w_ref    : (1, D, 4*Dh)  bf16   folded per-head projection weights [q | k | v | g]
    b_ref    : (1, 1, 4*Dh)  f32    folded per-head projection biases
    mask_ref : (1, S, S)     f32    per-head additive decay mask (streamed per head)
    wn_ref   : (1, Dh)       f32    RMSNorm weight
    o_ref    : (1, S, Dh)    bf16   gated, normalized per-head retention output
    """
    f32, bf16 = jnp.float32, jnp.bfloat16
    Dh = head_dim

    # Fused projection for this head: one (S, D) x (D, 4*Dh) MXU pass.
    proj = jnp.dot(x_ref[...], w_ref[0], preferred_element_type=f32) + b_ref[0]
    q = proj[:, 0 * Dh:1 * Dh].astype(bf16)   # = scaling * rope(key proj)   (q/k swap folded in)
    k = proj[:, 1 * Dh:2 * Dh].astype(bf16)   # = rope(query proj)
    v = proj[:, 2 * Dh:3 * Dh].astype(bf16)
    g = proj[:, 3 * Dh:4 * Dh]                # gate kept in f32

    # Retention matrix q @ k^T  (bf16 operands, f32 accumulation).
    ret = jax.lax.dot_general(q, k, (((1,), (1,)), ((), ())),
                              preferred_element_type=f32)            # (S, S)
    denom = jnp.clip(jnp.sum(jnp.abs(ret), axis=-1, keepdims=True), 1.0, 50000.0)
    ret = ret * pl.reciprocal(denom, approx=True) + mask_ref[0]      # denom >= 1 -> approx safe

    o = jnp.dot(ret.astype(bf16), v, preferred_element_type=f32)     # (S, Dh)

    # RMSNorm over head_dim (f32) then gate.
    o = o * jax.lax.rsqrt(jnp.mean(o * o, axis=-1, keepdims=True) + eps) * wn_ref[...]
    o_ref[0] = (o * g).astype(o_ref.dtype)


# --------------------------------------------------------------------------- kernel 2
def out_proj_kernel(o_ref, w_ref, b_ref, out_ref):
    """Full-contraction output projection on a row tile: (tm, D) x (D, D) + bias."""
    out_ref[...] = (jnp.dot(o_ref[...], w_ref[...], preferred_element_type=jnp.float32)
                    + b_ref[...]).astype(out_ref.dtype)


# --------------------------------------------------------------------------- wrapper
def _fold_rope_swap(w, b, f_pair, scale):
    """Fold the module's (buggy) rope + pair mixing + scaling into (w, b). Exact algebra:

      new col 2p   = f[p] * scale * (w[:, 2p] - w[:, 2p+1])
      new col 2p+1 = f[p] * scale * (w[:, 2p] + w[:, 2p+1])

    (apply_rope uses freqs_sin for BOTH rotation factors, so cos==sin==f.)
    """
    din, dout = w.shape
    w2 = w.reshape(din, dout // 2, 2)
    b2 = b.reshape(dout // 2, 2)
    f = (f_pair * scale).astype(jnp.float32)
    w_new = jnp.stack([f * (w2[..., 0] - w2[..., 1]),
                       f * (w2[..., 0] + w2[..., 1])], axis=-1).reshape(din, dout)
    b_new = jnp.stack([f * (b2[..., 0] - b2[..., 1]),
                       f * (b2[..., 0] + b2[..., 1])], axis=-1).reshape(dout)
    return w_new, b_new


def retation_forward(x, p, freqs_cos, freqs_sin, mask, *, num_heads, eps=1e-5):
    del freqs_cos                                   # dead in the module (apply_rope rebinds sin<-cos)
    batch, S, D = x.shape
    assert batch == 1, "the torch module's view() only admits batch == 1"
    H = num_heads
    Dh = D // H
    assert D % H == 0 and Dh % 2 == 0
    scaling = Dh ** -0.5
    f32, bf16 = jnp.float32, jnp.bfloat16

    # ---- fold rope + pair mixing + scaling into the projection weights (exact) -------
    # column pair p = h*(Dh//2) + j  <->  freqs_sin[h, j]
    f_pair = freqs_sin.astype(f32).reshape(-1)                       # (D//2,)
    wq_eff, bq_eff = _fold_rope_swap(p["wk"].astype(f32), p["bk"].astype(f32), f_pair, scaling)
    wk_eff, bk_eff = _fold_rope_swap(p["wq"].astype(f32), p["bq"].astype(f32), f_pair, 1.0)

    # ---- fuse the four projections, grouped per head: [q_h | k_h | v_h | g_h] --------
    w_stack = jnp.stack([wq_eff, wk_eff, p["wv"].astype(f32), p["wg"].astype(f32)], 0)  # (4,D,D)
    b_stack = jnp.stack([bq_eff, bk_eff, p["bv"].astype(f32), p["bg"].astype(f32)], 0)  # (4,D)
    w_all = w_stack.reshape(4, D, H, Dh).transpose(2, 1, 0, 3).reshape(H, D, 4 * Dh).astype(bf16)
    b_all = b_stack.reshape(4, H, Dh).transpose(1, 0, 2).reshape(H, 1, 4 * Dh)

    x2 = x[0].astype(bf16)                                           # (S, D)
    mask3 = mask[0, :, :S, :S].astype(f32)                           # (H, S, S)
    wnorm2 = p["wnorm"].astype(f32).reshape(1, Dh)

    # ---- kernel 1: retention per head (grid over heads, mask streamed per head) ------
    flops1 = 2 * S * D * 4 * D + 4 * H * S * S * Dh
    bytes1 = (x2.size * 2 + w_all.size * 2 + b_all.size * 4 + mask3.size * 4
              + wnorm2.size * 4 + H * S * Dh * 2)
    o_heads = pl.pallas_call(
        functools.partial(retention_head_kernel, head_dim=Dh, eps=eps),
        out_shape=jax.ShapeDtypeStruct((H, S, Dh), bf16),
        grid=(H,),
        in_specs=[
            pl.BlockSpec((S, D), lambda h: (0, 0)),              # x (resident)
            pl.BlockSpec((1, D, 4 * Dh), lambda h: (h, 0, 0)),   # fused weights, per head
            pl.BlockSpec((1, 1, 4 * Dh), lambda h: (h, 0, 0)),   # fused biases, per head
            pl.BlockSpec((1, S, S), lambda h: (h, 0, 0)),        # mask, per head (streamed)
            pl.BlockSpec((1, Dh), lambda h: (0, 0)),             # RMSNorm weight
        ],
        out_specs=pl.BlockSpec((1, S, Dh), lambda h: (h, 0, 0)),
        compiler_params=pltpu.CompilerParams(
            dimension_semantics=("parallel",),                   # megacore sharding on v7x
            vmem_limit_bytes=48 * 1024 * 1024),                  # v7x-safe (64 MiB physical)
        cost_estimate=pl.CostEstimate(flops=flops1, transcendentals=2 * H * S,
                                      bytes_accessed=bytes1),
    )(x2, w_all, b_all, mask3, wnorm2)

    # layout plumbing only: (H, S, Dh) -> (S, D) with head-major columns
    o_full = o_heads.transpose(1, 0, 2).reshape(S, D)

    # ---- kernel 2: full-width output projection (contraction K = D), row-tiled -------
    tm = S if S <= 256 else 256
    assert S % tm == 0
    wp = p["wp"].astype(bf16)
    bp = p["bp"].astype(f32).reshape(1, D)
    flops2 = 2 * S * D * D
    bytes2 = S * D * 2 + D * D * 2 + D * 4 + S * D * 4
    out = pl.pallas_call(
        out_proj_kernel,
        out_shape=jax.ShapeDtypeStruct((S, D), f32),
        grid=(S // tm,),
        in_specs=[
            pl.BlockSpec((tm, D), lambda i: (i, 0)),
            pl.BlockSpec((D, D), lambda i: (0, 0)),
            pl.BlockSpec((1, D), lambda i: (0, 0)),
        ],
        out_specs=pl.BlockSpec((tm, D), lambda i: (i, 0)),
        compiler_params=pltpu.CompilerParams(
            dimension_semantics=("parallel",),
            vmem_limit_bytes=48 * 1024 * 1024),
        cost_estimate=pl.CostEstimate(flops=flops2, transcendentals=0,
                                      bytes_accessed=bytes2),
    )(o_full, wp, bp)
    return out[None]                                              # (1, S, D)


# --------------------------------------------------------------------------- pure-JAX reference (f32)
def retation_reference(x, p, freqs_cos, freqs_sin, mask, *, num_heads, eps=1e-5):
    del freqs_cos
    _, S, D = x.shape
    Dh = D // num_heads
    xf = x[0].astype(jnp.float32)
    k = xf @ p["wk"] + p["bk"]
    q = xf @ p["wq"] + p["bq"]
    v = xf @ p["wv"] + p["bv"]
    g = xf @ p["wg"] + p["bg"]
    k = k * (Dh ** -0.5)
    k, q, v = (t.reshape(S, num_heads, Dh) for t in (k, q, v))

    f = freqs_sin[None]                                            # (1, H, Dh//2)

    def rope(t):
        tr = t.reshape(S, num_heads, Dh // 2, 2)
        r, i = tr[..., 0], tr[..., 1]
        return jnp.stack([r * f - i * f, r * f + i * f], -1).reshape(S, num_heads, Dh)

    qh = rope(k).transpose(1, 0, 2)                                # swapped q <- rope(k)
    kh = rope(q).transpose(1, 0, 2)                                # swapped k <- rope(q)
    vh = v.transpose(1, 0, 2)

    ret = jnp.einsum("hsd,htd->hst", qh, kh)
    denom = jnp.clip(jnp.abs(ret).sum(-1, keepdims=True), 1.0, 50000.0)
    ret = ret / denom + mask[0, :, :S, :S]
    out = jnp.einsum("hst,htd->hsd", ret, vh)
    out = out * jax.lax.rsqrt(jnp.mean(out * out, -1, keepdims=True) + eps) * p["wnorm"]
    out = out.transpose(1, 0, 2).reshape(S, D)
    out = out * g
    out = out @ p["wp"] + p["bp"]
    return out[None]


# --------------------------------------------------------------------------- main
if __name__ == "__main__":
    batch, seq_len, d_model, num_heads = 1, 64, 128, 4     # Config-consistent small shapes
    head_dim = d_model // num_heads
    max_seq = 128
    eps = 1e-5

    key = jax.random.PRNGKey(0)
    ks = jax.random.split(key, 12)
    init_w = lambda k: (0.05 * jax.random.normal(k, (d_model, d_model))).astype(jnp.float32)
    init_b = lambda k: (0.05 * jax.random.normal(k, (d_model,))).astype(jnp.float32)

    # weights stored as (in, out) == nn.Linear.weight.T ; y = x @ W + b
    params = {
        "wk": init_w(ks[0]), "bk": init_b(ks[1]),
        "wq": init_w(ks[2]), "bq": init_b(ks[3]),
        "wv": init_w(ks[4]), "bv": init_b(ks[5]),
        "wg": init_w(ks[6]), "bg": init_b(ks[7]),
        "wp": init_w(ks[8]), "bp": init_b(ks[9]),
        "wnorm": jnp.ones((head_dim,), jnp.float32),        # RMSNorm weight
    }

    x = jax.random.normal(ks[10], (batch, seq_len, d_model), jnp.float32)

    # rope tables: shape (num_heads, head_dim//2), as forced by reshape_for_broadcast
    pos = jnp.arange(num_heads, dtype=jnp.float32)[:, None]
    inv = 1.0 / (10000.0 ** (jnp.arange(0, head_dim, 2, dtype=jnp.float32) / head_dim))[None, :]
    ang = pos * inv
    freqs_cos, freqs_sin = jnp.cos(ang), jnp.sin(ang)

    # retnet-style additive decay mask, shape (1, H, max_seq, max_seq), finite
    gammas = 1.0 - jnp.exp2(-5.0 - jnp.arange(num_heads, dtype=jnp.float32))
    idx = jnp.arange(max_seq)
    diff = (idx[:, None] - idx[None, :]).astype(jnp.float32)
    decay = jnp.where(diff >= 0, gammas[:, None, None] ** diff[None], 0.0)
    mask = decay[None]                                      # (1, H, 128, 128)

    out = retation_forward(x, params, freqs_cos, freqs_sin, mask,
                           num_heads=num_heads, eps=eps)
    out = jax.block_until_ready(out)

    ref = retation_reference(x, params, freqs_cos, freqs_sin, mask,
                             num_heads=num_heads, eps=eps)

    assert out.shape == (batch, seq_len, d_model), out.shape
    max_err = float(jnp.max(jnp.abs(out - ref)))
    ref_scale = max(1.0, float(jnp.max(jnp.abs(ref))))
    # bf16 matmul operands + approx reciprocal -> tolerance is looser than pure f32.
    assert max_err / ref_scale < 5e-2, f"mismatch vs f32 reference: {max_err} (scale {ref_scale})"
    print("KERNEL_OK")
</pallas_src>

<mosaic_0001>
module attributes {stable_mosaic.version = 11 : i64} {
  func.func @retention_head_kernel(%arg0: i32, %arg1: memref<64x128xbf16, #tpu.memory_space<vmem>>, %arg2: memref<1x128x128xbf16, #tpu.memory_space<vmem>>, %arg3: memref<1x1x128xf32, #tpu.memory_space<vmem>>, %arg4: memref<1x64x64xf32, #tpu.memory_space<vmem>>, %arg5: memref<1x32xf32, #tpu.memory_space<vmem>>, %arg6: memref<1x64x32xbf16, #tpu.memory_space<vmem>>) attributes {dimension_semantics = [#tpu.dimension_semantics<parallel>], iteration_bounds = array<i64: 4>, scalar_prefetch = 0 : i64, scratch_operands = 0 : i64, tpu.core_type = #tpu.core_type<tc>, window_params = [{pipeline_mode = #tpu.pipeline_mode<synchronous>, transform_indices = @transform_0, window_bounds = array<i64: 64, 128>}, {transform_indices = @transform_1, window_bounds = array<i64: 1, 128, 128>}, {transform_indices = @transform_2, window_bounds = array<i64: 1, 1, 128>}, {transform_indices = @transform_3, window_bounds = array<i64: 1, 64, 64>}, {pipeline_mode = #tpu.pipeline_mode<synchronous>, transform_indices = @transform_4, window_bounds = array<i64: 1, 32>}, {transform_indices = @transform_5, window_bounds = array<i64: 1, 64, 32>}]} {
    %c0 = arith.constant 0 : index
    %c0_0 = arith.constant 0 : index
    %0 = vector.load %arg1[%c0, %c0_0] : memref<64x128xbf16, #tpu.memory_space<vmem>>, vector<64x128xbf16>
    %c0_1 = arith.constant 0 : index
    %c0_2 = arith.constant 0 : index
    %c0_3 = arith.constant 0 : index
    %1 = vector.load %arg2[%c0_1, %c0_2, %c0_3] : memref<1x128x128xbf16, #tpu.memory_space<vmem>>, vector<1x128x128xbf16>
    %2 = vector.shape_cast %1 : vector<1x128x128xbf16> to vector<128x128xbf16>
    %cst = arith.constant dense<0.000000e+00> : vector<64x128xf32>
    %3 = tpu.matmul %0, %2, %cst {dimension_numbers = #tpu.dot_dimension_numbers<[1], [0], [0], [1], [0, 0, 1, 1], [], []>} : vector<64x128xbf16>, vector<128x128xbf16>, vector<64x128xf32> -> vector<64x128xf32>
    %c0_4 = arith.constant 0 : index
    %c0_5 = arith.constant 0 : index
    %c0_6 = arith.constant 0 : index
    %4 = vector.load %arg3[%c0_4, %c0_5, %c0_6] : memref<1x1x128xf32, #tpu.memory_space<vmem>>, vector<1x1x128xf32>
    %5 = vector.shape_cast %4 : vector<1x1x128xf32> to vector<1x128xf32>
    %6 = vector.broadcast %5 : vector<1x128xf32> to vector<64x128xf32>
    %7 = arith.addf %3, %6 : vector<64x128xf32>
    %8 = vector.extract_strided_slice %7 {offsets = [0, 0], sizes = [64, 32], strides = [1, 1]} : vector<64x128xf32> to vector<64x32xf32>
    %9 = arith.truncf %8 : vector<64x32xf32> to vector<64x32xbf16>
    %10 = vector.extract_strided_slice %7 {offsets = [0, 32], sizes = [64, 32], strides = [1, 1]} : vector<64x128xf32> to vector<64x32xf32>
    %11 = arith.truncf %10 : vector<64x32xf32> to vector<64x32xbf16>
    %12 = vector.extract_strided_slice %7 {offsets = [0, 64], sizes = [64, 32], strides = [1, 1]} : vector<64x128xf32> to vector<64x32xf32>
    %13 = arith.truncf %12 : vector<64x32xf32> to vector<64x32xbf16>
    %14 = vector.extract_strided_slice %7 {offsets = [0, 96], sizes = [64, 32], strides = [1, 1]} : vector<64x128xf32> to vector<64x32xf32>
    %cst_7 = arith.constant dense<0.000000e+00> : vector<64x64xf32>
    %15 = tpu.matmul %9, %11, %cst_7 {dimension_numbers = #tpu.dot_dimension_numbers<[1], [1], [0], [0], [0, 0, 1, 0], [], []>} : vector<64x32xbf16>, vector<64x32xbf16>, vector<64x64xf32> -> vector<64x64xf32>
    %16 = math.absf %15 : vector<64x64xf32>
    %cst_8 = arith.constant dense<0.000000e+00> : vector<64xf32>
    %17 = vector.multi_reduction <add>, %16, %cst_8 [1] : vector<64x64xf32> to vector<64xf32>
    %18 = vector.shape_cast %17 : vector<64xf32> to vector<64x1xf32>
    %cst_9 = arith.constant 1.000000e+00 : f32
    %cst_10 = arith.constant 5.000000e+04 : f32
    %19 = vector.broadcast %cst_9 : f32 to vector<64x1xf32>
    %20 = arith.maximumf %19, %18 : vector<64x1xf32>
    %21 = vector.broadcast %cst_10 : f32 to vector<64x1xf32>
    %22 = arith.minimumf %21, %20 : vector<64x1xf32>
    %23 = tpu.reciprocal %22 {approx = true} : vector<64x1xf32> -> vector<64x1xf32>
    %24 = vector.broadcast %23 : vector<64x1xf32> to vector<64x64xf32>
    %25 = arith.mulf %15, %24 : vector<64x64xf32>
    %c0_11 = arith.constant 0 : index
    %c0_12 = arith.constant 0 : index
    %c0_13 = arith.constant 0 : index
    %26 = vector.load %arg4[%c0_11, %c0_12, %c0_13] : memref<1x64x64xf32, #tpu.memory_space<vmem>>, vector<1x64x64xf32>
    %27 = vector.shape_cast %26 : vector<1x64x64xf32> to vector<64x64xf32>
    %28 = arith.addf %25, %27 : vector<64x64xf32>
    %29 = arith.truncf %28 : vector<64x64xf32> to vector<64x64xbf16>
    %cst_14 = arith.constant dense<0.000000e+00> : vector<64x32xf32>
    %30 = tpu.matmul %29, %13, %cst_14 {dimension_numbers = #tpu.dot_dimension_numbers<[1], [0], [0], [1], [0, 0, 1, 1], [], []>} : vector<64x64xbf16>, vector<64x32xbf16>, vector<64x32xf32> -> vector<64x32xf32>
    %31 = arith.mulf %30, %30 : vector<64x32xf32>
    %cst_15 = arith.constant dense<0.000000e+00> : vector<64xf32>
    %32 = vector.multi_reduction <add>, %31, %cst_15 [1] : vector<64x32xf32> to vector<64xf32>
    %33 = vector.shape_cast %32 : vector<64xf32> to vector<64x1xf32>
    %cst_16 = arith.constant 3.200000e+01 : f32
    %34 = vector.broadcast %cst_16 : f32 to vector<64x1xf32>
    %35 = arith.divf %33, %34 : vector<64x1xf32>
    %cst_17 = arith.constant 9.99999974E-6 : f32
    %36 = vector.broadcast %cst_17 : f32 to vector<64x1xf32>
    %37 = arith.addf %35, %36 : vector<64x1xf32>
    %38 = math.rsqrt %37 : vector<64x1xf32>
    %39 = vector.broadcast %38 : vector<64x1xf32> to vector<64x32xf32>
    %40 = arith.mulf %30, %39 : vector<64x32xf32>
    %c0_18 = arith.constant 0 : index
    %c0_19 = arith.constant 0 : index
    %41 = vector.load %arg5[%c0_18, %c0_19] : memref<1x32xf32, #tpu.memory_space<vmem>>, vector<1x32xf32>
    %42 = vector.broadcast %41 : vector<1x32xf32> to vector<64x32xf32>
    %43 = arith.mulf %40, %42 : vector<64x32xf32>
    %44 = arith.mulf %43, %14 : vector<64x32xf32>
    %45 = arith.truncf %44 : vector<64x32xf32> to vector<64x32xbf16>
    %c0_20 = arith.constant 0 : index
    %c0_21 = arith.constant 0 : index
    %c0_22 = arith.constant 0 : index
    %46 = vector.load %arg6[%c0_20, %c0_21, %c0_22] : memref<1x64x32xbf16, #tpu.memory_space<vmem>>, vector<1x64x32xbf16>
    %47 = vector.shape_cast %46 : vector<1x64x32xbf16> to vector<64x32xbf16>
    %48 = vector.shape_cast %45 : vector<64x32xbf16> to vector<1x64x32xbf16>
    tpu.vector_store %arg6[%c0_20, %c0_21, %c0_22], %48 {strides = array<i32>} : memref<1x64x32xbf16, #tpu.memory_space<vmem>>, vector<1x64x32xbf16>,
    return
  }
  func.func @transform_0(%arg0: i32) -> (i32, i32) {
    %c0_i32 = arith.constant 0 : i32
    %c0_i32_0 = arith.constant 0 : i32
    %c0_i32_1 = arith.constant 0 : i32
    return %c0_i32, %c0_i32_0 : i32, i32
  }
  func.func @transform_1(%arg0: i32) -> (i32, i32, i32) {
    %c0_i32 = arith.constant 0 : i32
    %c0_i32_0 = arith.constant 0 : i32
    %c0_i32_1 = arith.constant 0 : i32
    return %arg0, %c0_i32, %c0_i32_0 : i32, i32, i32
  }
  func.func @transform_2(%arg0: i32) -> (i32, i32, i32) {
    %c0_i32 = arith.constant 0 : i32
    %c0_i32_0 = arith.constant 0 : i32
    %c0_i32_1 = arith.constant 0 : i32
    return %arg0, %c0_i32, %c0_i32_0 : i32, i32, i32
  }
  func.func @transform_3(%arg0: i32) -> (i32, i32, i32) {
    %c0_i32 = arith.constant 0 : i32
    %c0_i32_0 = arith.constant 0 : i32
    %c0_i32_1 = arith.constant 0 : i32
    return %arg0, %c0_i32, %c0_i32_0 : i32, i32, i32
  }
  func.func @transform_4(%arg0: i32) -> (i32, i32) {
    %c0_i32 = arith.constant 0 : i32
    %c0_i32_0 = arith.constant 0 : i32
    %c0_i32_1 = arith.constant 0 : i32
    return %c0_i32, %c0_i32_0 : i32, i32
  }
  func.func @transform_5(%arg0: i32) -> (i32, i32, i32) {
    %c0_i32 = arith.constant 0 : i32
    %c0_i32_0 = arith.constant 0 : i32
    %c0_i32_1 = arith.constant 0 : i32
    return %arg0, %c0_i32, %c0_i32_0 : i32, i32, i32
  }
}

</mosaic_0001>

<bundles_post_ra>
// kernel: tpu_custom_call.1
= control target key start
LH: loop header
LB: loop body
LE: loop exit
PB: predicated region body
PF: predicated region fallthrough
CT: control target
= control target key end

     0   :  { %10 = vsyncpa [#allocation3], 0  ;;  %s1854_s0 = inlined_call_operand.hbm [shape: bf16[64,128], index: 0, kind: input, shape index: {}]   ;;  %s1855_s1 = inlined_call_operand.hbm [shape: bf16[4,128,128], index: 1, kind: input, shape index: {}]   ;;  %s1856_s2 = inlined_call_operand.vmem [shape: f32[4,1,128], index: 2, kind: input, shape index: {}]   ;;  %s1857_s3 = inlined_call_operand.hbm [shape: f32[4,64,64], index: 3, kind: input, shape index: {}]   ;;  %s1858_s4 = inlined_call_operand.vmem [shape: f32[1,32], index: 4, kind: input, shape index: {}]   ;;  %s1859_s5 = inlined_call_operand.vmem [shape: bf16[4,64,32], index: 5, kind: output, shape index: {}]  }
   0x1   :  { %11 = vsyncpa [#allocation5], 0 }
   0x2   :  { %13 = vsyncpa [#allocation5 + $0x1], 0  ;;  %s1458_s18 = smov 0   ;;  %s1460_s19 = smov 0  }
   0x3   :  { %s1462_s20 = smov 0   ;;  %s1464_s21 = smov 0  }
   0x4 LB: > { %s1479_s22 = sadd.s32 1, %s1416_s21   ;;  %s47_s23 = sadd.s32 1, %s1412_s20  ;;  %s1416_s21 = sphi %s1464_s21, %s1876_s21   ;;  %s1412_s20 = sphi %s1462_s20, %s1875_s20   ;;  %s1408_s19 = sphi %s1460_s19, %s1874_s19   ;;  %s1404_s18 = sphi %s1458_s18, %s1873_s18  }
   0x5   : > { %s44_s24 = ssub.s32 %s1416_s21, %s1479_s22  ;;  %p54_p0 = scmp.ne.s32.totalorder %s1412_s20, %s1408_s19 }
   0x6   : > { %p45_p1 = scmp.eq.s32.totalorder %s44_s24, 0  ;;  %p55_p2 = scmp.eq.s32.totalorder %s1416_s21, 0 }
   0x7   : > { %p1204_p4 = scmp.lt.s32.totalorder %s1416_s21, 4  ;;  %s199_s26 = sand.u32 1, %s1416_s21  }
   0x8   : > { %s1488_s25 = scalar_select %p45_p1, %s1412_s20, %s47_s23  }
   0x9   : > { %p56_p3 = por %p55_p2, %p54_p0  ;;  %s201_s27 = sand.u32 1, %s1412_s20  }
   0xa   : > { %s1493_s28 = sshll.u32 %s201_s27, 6  ;;  %s1077_s29 = sshll.u32 %s1416_s21, 10 }
   0xb   : > { %s1501_s7 = scalar_lea.hbm %s1855_s1, %s1077_s29  ;;  %s203_s8 = scalar_lea.vmem [#allocation4], %s1493_s28 }
   0xc   : > { %s210_s9 = sshll.u32 %s203_s8, 4  ;;  %p1504_p5 = pnand %p1204_p4, %p56_p3  ;;  %s1508_s9 = int_to_ptr.vmem [resolvable:$true] %s210_s9 }
   0xd   : > { %s1510_s11 = scalar_lea.sflag [#allocation5], %s199_s26  ;;  %s1290_s12 = scalar_lea.hbm %s1501_s7, 1024 }
   0xe   : > { %p1291_p6 = scmp.ne.s32.totalorder %s1501_s7, %s1290_s12  ;;  %p1292_p7 = pneg %p1504_p5 }
   0xf   : > { %s1295_s15 = scalar_lea.hbm %s1855_s1, 4096  ;;  %p1296_p10 = scmp.lt.u32.totalorder %s1501_s7, %s1855_s1 }
  0x10   : > { %p1293_p8 = pnand %p1292_p7, %p1291_p6  ;;  %p1297_p11 = scmp.lt.u32.totalorder %s1295_s15, %s1290_s12 }
  0x11   : > { %p1299_p13 = scmp.lt.u32.totalorder %s1290_s12, %s1501_s7 }
  0x12   : > { %p1294_p9 = pneg %p1293_p8  ;;  %p1298_p12 = por %p1297_p11, %p1296_p10 }
  0x14   : > { %p1300_p0 = por %p1299_p13, %p1298_p12 }
  0x16   : > { %p1301_p1 = pnand %p1300_p0, %p1294_p9 }
  0x18   : > { %1304 = shalt.err (!%p1301_p1)
}
  0x19   : > { %s1305_s23 = scalar_lea.vmem %s1508_s9, 1024  ;;  %s1418_s24 = smov [#allocation4]  }
  0x1a   : > { %p1306_p2 = scmp.ne.s32.totalorder %s1508_s9, %s1305_s23  ;;  %s1310_s26 = sshll.u32 %s1418_s24, 4  ;;  %s1311_s26 = int_to_ptr.vmem [resolvable:$false] %s1310_s26 }
  0x1b   : > { %s1312_s27 = scalar_lea.vmem %s1311_s26, 2048  ;;  %p1313_p6 = scmp.lt.s32.totalorder %s1508_s9, %s1311_s26 }
  0x1c   : > { %p1308_p3 = pnand %p1306_p2, %p1292_p7  ;;  %p1314_p8 = scmp.lt.s32.totalorder %s1312_s27, %s1305_s23 }
  0x1e   : > { %p1309_p4 = pneg %p1308_p3  ;;  %p1315_p10 = por %p1314_p8, %p1313_p6 }
  0x20   : > { %p1316_p11 = pnand %p1315_p10, %p1309_p4 }
  0x22   : > { %1319 = shalt.err (!%p1316_p11)
}
  0x23   : > { %s1419_s30 = smov 64   ;;  %s1420_s6 = smov 4  }
  0x24   : > { %1199 = dma.hbm_to_vmem [thread:$0]  (!%p1504_p5), %s1501_s7, 1024, %s1508_s9, %s1510_s11, %s1419_s30, %s1419_s30, %s1420_s6  }
  0x25   : > { %s1546_s13 = scalar_lea.hbm %s1857_s3, %s1077_s29  ;;  %s230_s14 = scalar_lea.vmem [#allocation6], %s1493_s28 }
  0x26   : > { %s237_s15 = sshll.u32 %s230_s14, 4  ;;  %s1550_s16 = sadd.s32 4294967295, %s1416_s21   ;;  %s1563_s15 = int_to_ptr.vmem [resolvable:$true] %s237_s15 }
  0x27   : > { %p60_p9 = scmp.ne.s32.totalorder %s1408_s19, %s1404_s18  ;;  %p1860_p12 = scmp.eq.s32.totalorder %s1550_s16, 0 }
  0x28   : > { %p1030_p13 = scmp.ge.s32.totalorder %s1416_s21, 1  ;;  %p170_p0 = scmp.lt.s32.totalorder %s1416_s21, 5 }
  0x29   : > { %p1559_p1 = por %p1860_p12, %p60_p9  ;;  %s1421_s29 = smov [#allocation2]  }
  0x2a   : > { %p1565_p2 = pnand %p1030_p13, %p170_p0  ;;  %s1569_s9 = sshll.u32 %s1421_s29, 4  ;;  %s183_s9 = int_to_ptr.vmem [resolvable:$true] %s1569_s9 }
  0x2b   : > { %s1864_s7 = scalar_select %p1559_p1, 1, 0 }
  0x2c   : > { %s1865_s28 = scalar_select %p1565_p2, 1, 0 }
  0x2d   : > { %s1320_s18 = scalar_lea.hbm %s1546_s13, 1024  ;;  %s1325_s23 = scalar_lea.hbm %s1857_s3, 4096 }
  0x2e   : > { %p1321_p4 = scmp.ne.s32.totalorder %s1546_s13, %s1320_s18  ;;  %p1326_p10 = scmp.lt.u32.totalorder %s1546_s13, %s1857_s3 }
  0x2f   : > { %p1327_p11 = scmp.lt.u32.totalorder %s1325_s23, %s1320_s18  ;;  %p1329_p13 = scmp.lt.u32.totalorder %s1320_s18, %s1546_s13 }
  0x30   : > { %p1323_p6 = pnand %p1321_p4, %p1292_p7 }
  0x31   : > { %p1328_p9 = por %p1327_p11, %p1326_p10 }
  0x32   : > { %p1324_p8 = pneg %p1323_p6 }
  0x33   : > { %p1330_p0 = por %p1329_p13, %p1328_p9 }
  0x35   : > { %p1331_p12 = pnand %p1330_p0, %p1324_p8 }
  0x37   : > { %1334 = shalt.err (!%p1331_p12)
}
  0x38   : > { %s1335_s27 = scalar_lea.vmem %s1563_s15, 1024  ;;  %s1422_s8 = smov [#allocation6]  }
  0x39   : > { %p1336_p4 = scmp.ne.s32.totalorder %s1563_s15, %s1335_s27  ;;  %s1340_s12 = sshll.u32 %s1422_s8, 4  ;;  %s1341_s12 = int_to_ptr.vmem [resolvable:$false] %s1340_s12 }
  0x3a   : > { %s1342_s14 = scalar_lea.vmem %s1341_s12, 2048  ;;  %p1343_p1 = scmp.lt.s32.totalorder %s1563_s15, %s1341_s12 }
  0x3b   : > { %p1338_p6 = pnand %p1336_p4, %p1292_p7  ;;  %p1344_p10 = scmp.lt.s32.totalorder %s1342_s14, %s1335_s27 }
  0x3d   : > { %p1339_p3 = pneg %p1338_p6  ;;  %p1345_p11 = por %p1344_p10, %p1343_p1 }
  0x3f   : > { %p1346_p9 = pnand %p1345_p11, %p1339_p3 }
  0x41   : > { %1349 = shalt.err (!%p1346_p9)
}
  0x42   : > { %s1423_s29 = smov 128   ;;  %s1424_s18 = smov 8  }
  0x43   : > { %1202 = dma.hbm_to_vmem [thread:$0]  (!%p1504_p5), %s1546_s13, 1024, %s1563_s15, %s1510_s11, %s1423_s29, %s1423_s29, %s1424_s18  }
  0x44   : > { %p1866_p7 = scmp.eq.s32.totalorder %s1550_s16, 0  ;;  %p1867_p12 = pneg %p1565_p2 }
  0x45   : > { %s1350_s24 = scalar_lea.hbm %s1854_s0, 512 }
  0x46   : > { %p1603_p8 = pnand %p1867_p12, %p1866_p7  ;;  %p1351_p1 = scmp.ne.s32.totalorder %s1854_s0, %s1350_s24 }
  0x47   : > { %p1357_p0 = scmp.lt.u32.totalorder %s1350_s24, %s1854_s0 }
  0x48   : > { %p1352_p3 = pneg %p1603_p8 }
  0x4a   : > { %p1353_p5 = pnand %p1352_p3, %p1351_p1 }
  0x4c   : > { %p1354_p13 = pneg %p1353_p5 }
  0x4e   : > { %p1359_p4 = pnand %p1357_p0, %p1354_p13 }
  0x50   : > { %1362 = shalt.err (!%p1359_p4)
}
  0x51   : > { %s1363_s13 = scalar_lea.vmem %s183_s9, 512  ;;  %p1371_p9 = scmp.lt.s32.totalorder %s183_s9, %s183_s9 }
  0x52   : > { %p1364_p6 = scmp.ne.s32.totalorder %s183_s9, %s1363_s13  ;;  %p1372_p7 = scmp.lt.s32.totalorder %s1363_s13, %s1363_s13 }
  0x54   : > { %p1366_p10 = pnand %p1364_p6, %p1352_p3  ;;  %p1373_p12 = por %p1372_p7, %p1371_p9 }
  0x56   : > { %p1367_p11 = pneg %p1366_p10 }
  0x58   : > { %p1374_p2 = pnand %p1373_p12, %p1367_p11 }
  0x5a   : > { %1377 = shalt.err (!%p1374_p2)
}
  0x5b   : > { %1195 = dma.hbm_to_vmem [thread:$0]  (!%p1603_p8), %s1854_s0, 512, %s183_s9, [#allocation3], %s1419_s30, %s1419_s30, %s1420_s6  }
  0x5c   : > { %p1869_p1 = scmp.ne.s32.totalorder %s1865_s28, 0 }
  0x5d   : > { %p1870_p3 = scmp.eq.s32.totalorder (!%p1869_p1), %s1550_s16, 0 }
  0x5e   : > { %249 = sbr.rel (%p1869_p1) target bundleno = 1293 (0x50d), region = 40 }
  0x65   : > { %1395 = dma.done.wait (%p1870_p3), [#allocation3], 512   ;;  %p1871_p5 = pmov %p1870_p3 }
  0x66   : > { %s255_s12 = sand.u32 1, %s1550_s16   ;;  %s257_s14 = sand.u32 1, %s1408_s19  }
  0x67   : > { %1397 = vsyncadd (%p1871_p5), [#allocation3], 4294966784  ;;  %s1634_s29 = sshll.u32 %s257_s14, 6  ;;  %s256_s18 = scalar_lea.sflag [#allocation5], %s255_s12 }
  0x68   : > { %s259_s21 = scalar_lea.vmem [#allocation4], %s1634_s29  ;;  %p1872_p2 = scmp.ne.s32.totalorder %s1864_s7, 0 }
  0x6a   : > { %1399 = dma.done.wait (%p1872_p2), %s256_s18, 2048  }
  0x6b   : > { %1401 = vsyncadd (%p1872_p2), %s256_s18, 4294965248  ;;  %v1246_v0 = vld [vmem:[%s259_s21] sm:$0xff]   ;;  %v1247_v1 = vld [vmem:[%s259_s21 + $0x8] sm:$0xff]   ;;  %p303_p8 = scmp.lt.s32.totalorder %s1550_s16, 3  ;;  %vm496_vm0 = vcmask 261120   ;;  %s1425_s28 = smov 96  }
  0x6c   : > { %1116 = vmatprep.subr.bf16.mxu0 %v1246_v0  ;;  %v1248_v2 = vld [vmem:[%s259_s21 + $0x10] sm:$0xff]   ;;  %v1249_v3 = vld [vmem:[%s259_s21 + $0x18] sm:$0xff]   ;;  %v1254_v4 = vld [vmem:[#allocation2] sm:$0xff]   ;;  %s1426_s9 = smov 64   ;;  %vm594_vm1 = vcmask 523264   ;;  %s1427_s17 = smov 32  }
  0x6d   : > { %1117 = vmatpush3.bf16.msra.mxu0 %v1246_v0  ;;  %1132 = vmatprep.mubr.bf16.mxu0 %v1254_v4  ;;  %v1250_v5 = vld [vmem:[%s259_s21 + $0x20] sm:$0xff]   ;;  %v1251_v6 = vld [vmem:[%s259_s21 + $0x28] sm:$0xff]   ;;  %v1252_v7 = vld [vmem:[%s259_s21 + $0x30] sm:$0xff]   ;;  %s1878_s16 = smov (!%p303_p8, %s1550_s16), 3  ;;  %s1737_s23 = scalar_lea.vmem [#allocation6], %s1634_s29  ;;  %vm912_vm2 = vcmask 257024  }
  0x6e   : > { %1118 = vmatprep.subr.bf16.mxu0 %v1247_v1  ;;  %v1253_v8 = vld [vmem:[%s259_s21 + $0x38] sm:$0xff]   ;;  %v1255_v9 = vld [vmem:[#allocation2 + $0x8] sm:$0xff]   ;;  %v1256_v10 = vld [vmem:[#allocation2 + $0x10] sm:$0xff]   ;;  %s305_s7 = scalar_lea.vmem %s1856_s2, %s1878_s16  ;;  %s1079_s27 = sshll.u32 %s1878_s16, 5 }
  0x6f   : > { %v1257_v11 = vld [vmem:[#allocation2 + $0x18] sm:$0xff]   ;;  %v1045_v13 = vld [vmem:[%s305_s7] ss:$0 sm:$0xff]  ;;  %s1817_s13 = scalar_lea.vmem %s1859_s5, %s1079_s27 }
  0x71   : > { %1119 = vmatpush3.bf16.msra.mxu0 %v1247_v1 }
  0x72   : > { %1120 = vmatprep.subr.bf16.mxu0 %v1248_v2 }
  0x75   : > { %1121 = vmatpush3.bf16.msra.mxu0 %v1248_v2 }
  0x76   : > { %1122 = vmatprep.subr.bf16.mxu0 %v1249_v3 }
  0x79   : > { %1123 = vmatpush3.bf16.msra.mxu0 %v1249_v3 }
  0x7a   : > { %1124 = vmatprep.subr.bf16.mxu0 %v1250_v5 }
  0x7d   : > { %1125 = vmatpush3.bf16.msra.mxu0 %v1250_v5 }
  0x7e   : > { %1126 = vmatprep.subr.bf16.mxu0 %v1251_v6 }
  0x81   : > { %1127 = vmatpush3.bf16.msra.mxu0 %v1251_v6 }
  0x82   : > { %1128 = vmatprep.subr.bf16.mxu0 %v1252_v7 }
  0x85   : > { %1129 = vmatpush3.bf16.msra.mxu0 %v1252_v7 }
  0x86   : > { %1130 = vmatprep.subr.bf16.mxu0 %v1253_v8 }
  0x89   : > { %1131 = vmatpush3.bf16.msra.mxu0 %v1253_v8 }
  0x8c   : > { %1133 = vmatmul.mubr.bf16.vlgmr.msra.gmra.mrb[0].mxu0 %v1255_v9 }
  0x8d   : > { %1136 = vmatprep.mubr.bf16.mxu0 %v1256_v10 }
  0x94   : > { %1137 = vmatmul.mubr.bf16.gmra.mrb[4].mxu0 %v1257_v11 }
 0x15f   : > { %v1134_v12 = vpop.f32.mrb[0].mxu0 }
 0x160   : > { %v449_v14 = vpop.f32.mrb[1].mxu0  ;;  %v1657_v21 = vadd.f32 %v1134_v12, %v1045_v13 }
 0x161   : > { %v1135_v15 = vpop.f32.mrb[2].mxu0  ;;  %v1649_v17 = vadd.f32 %v1045_v13, %v449_v14 }
 0x162   : > { %v452_v16 = vpop.f32.mrb[3].mxu0  ;;  %v1653_v19 = vadd.f32 %v1135_v15, %v1045_v13 }
 0x163   : > { %v1651_v18 = vadd.f32 %v1045_v13, %v452_v16 }
 0x164   : > { %v1662_v24 = vpack.c.bf16 %v1653_v19, %v1657_v21 }
 0x165   : > { %v480_v20 = vpack.c.bf16 %v1651_v18, %v1649_v17 }
 0x167   : > { %v1138_v22 = vpop.f32.mrb[4].mxu0  ;;  %488 = vrot.lane.b32.xlu0 %v480_v20, %s1425_s28  ;;  %1148 = vmatprep.mubr.msk.bf16.mxu1 %vm496_vm0, %v480_v20 }
 0x168   : > { %v465_v23 = vpop.f32.mrb[5].mxu0  ;;  %v1666_v28 = vadd.f32 %v1138_v22, %v1045_v13 }
 0x169   : > { %v1664_v25 = vadd.f32 %v1045_v13, %v465_v23  ;;  %v1139_v26 = vpop.f32.mrb[6].mxu0 }
 0x16a   : > { %v468_v27 = vpop.f32.mrb[7].mxu0  ;;  %v1668_v29 = vadd.f32 %v1139_v26, %v1045_v13 }
 0x16b   : > { %v1670_v30 = vadd.f32 %v1045_v13, %v468_v27  ;;  %490 = vrot.lane.b32.xlu0 %v1662_v24, %s1425_s28 }
 0x16c   : > { %v483_v32 = vpack.c.bf16 %v1668_v29, %v1666_v28 }
 0x16d   : > { %v482_v31 = vpack.c.bf16 %v1670_v30, %v1664_v25 }
 0x16f   : > { %492 = vrot.lane.b32.xlu1 %v482_v31, %s1425_s28 }
 0x173   : > { %494 = vrot.lane.b32.xlu1 %v483_v32, %s1425_s28 }
 0x177   : > { %671 = vrot.lane.b32.xlu1 %v480_v20, %s1426_s9 }
 0x1d9   : > { %v489_v33 = vpop.permute.xlu0 %488 }
 0x1da   : > { %1180 = vmatprep.subr.msk.bf16.mxu1 %vm496_vm0, %v489_v33  ;;  %v510_v34 = vsel %vm496_vm0, %v489_v33, 0 }
 0x1db   : > { %1141 = vmatpush3.bf16.xpose.msra.mxu1 %v510_v34  ;;  %v651_v34 = vld [vmem:[%s1737_s23] sm:$0xff] }
 0x1dd   : > { %v491_v35 = vpop.permute.xlu0 %490 }
 0x1de   : > { %1181 = vmatprep.subr.msk.bf16.mxu1 %vm496_vm0, %v491_v35  ;;  %v513_v37 = vsel %vm496_vm0, %v491_v35, 0  ;;  %v652_v35 = vld [vmem:[%s1737_s23 + $0x8] sm:$0xff] }
 0x1e1   : > { %v493_v36 = vpop.permute.xlu1 %492 }
 0x1e2   : > { %v516_v40 = vsel %vm496_vm0, %v493_v36, 0 }
 0x1e3   : > { %1143 = vmatpush3.bf16.xpose.msra.mxu1 %v513_v37  ;;  %v653_v37 = vld [vmem:[%s1737_s23 + $0x10] sm:$0xff] }
 0x1e4   : > { %1182 = vmatprep.subr.msk.bf16.mxu1 %vm496_vm0, %v493_v36 }
 0x1e5   : > { %v495_v38 = vpop.permute.xlu1 %494 }
 0x1e6   : > { %v519_v41 = vsel %vm496_vm0, %v495_v38, 0 }
 0x1e9   : > { %v672_v39 = vpop.permute.xlu1 %671 }
 0x1ea   : > { %1156 = vmatprep.subr.bf16.mxu0 %v672_v39 }
 0x1eb   : > { %1145 = vmatpush3.bf16.xpose.msra.mxu1 %v516_v40  ;;  %1157 = vmatpush3.bf16.msra.mxu0 %v672_v39 }
 0x1ec   : > { %1183 = vmatprep.subr.msk.bf16.mxu1 %vm496_vm0, %v495_v38  ;;  %v654_v38 = vld [vmem:[%s1737_s23 + $0x18] sm:$0xff] }
 0x1f3   : > { %1147 = vmatpush3.bf16.xpose.msra.mxu1 %v519_v41 }
 0x1f4   : > { %1172 = vmatprep.subr.bf16.mxu1 %v672_v39 }
 0x1fa   : > { %1149 = vmatmul.mubr.msk.bf16.vlgmr.msra.gmra.mrb[0].mxu1 %vm496_vm0, %v1662_v24 }
 0x1fb   : > { %1152 = vmatprep.mubr.msk.bf16.mxu1 %vm496_vm0, %v482_v31  ;;  %1176 = vmatpush3.bf16.msra.mxu1 %v672_v39 }
 0x202   : > { %1153 = vmatmul.mubr.msk.bf16.gmra.mrb[4].mxu1 %vm496_vm0, %v483_v32 }
 0x2cd   : > { %v1690_v42 = vpop.f32.mrb[0].mxu1 }
 0x2ce   : > { %v588_v43 = vand.u32 2147483647, %v1690_v42  ;;  %v1693_v44 = vpop.f32.mrb[1].mxu1 }
 0x2cf   : > { %v586_v45 = vand.u32 2147483647, %v1693_v44  ;;  %v1696_v46 = vpop.f32.mrb[2].mxu1 }
 0x2d0   : > { %v1698_v47 = vpop.f32.mrb[3].mxu1  ;;  %v601_v48 = vsel %vm594_vm1, %v588_v43, 0.0  ;;  %v589_v49 = vand.u32 2147483647, %v1696_v46 }
 0x2d1   : > { %v587_v50 = vand.u32 2147483647, %v1698_v47  ;;  %602 = vadd.xlane.f32.xlu1 %v601_v48  ;;  %v595_v51 = vsel %vm594_vm1, %v586_v45, 0.0 }
 0x2d2   : > { %596 = vadd.xlane.f32.xlu0 %v595_v51  ;;  %v604_v54 = vsel %vm594_vm1, %v589_v49, 0.0 }
 0x2d3   : > { %v598_v52 = vsel %vm594_vm1, %v587_v50, 0.0 }
 0x2d5   : > { %599 = vadd.xlane.f32.xlu1 %v598_v52  ;;  %v1705_v53 = vpop.f32.mrb[4].mxu1 }
 0x2d6   : > { %v592_v55 = vand.u32 2147483647, %v1705_v53  ;;  %605 = vadd.xlane.f32.xlu0 %v604_v54  ;;  %v1709_v56 = vpop.f32.mrb[5].mxu1 }
 0x2d7   : > { %v590_v57 = vand.u32 2147483647, %v1709_v56  ;;  %v1712_v58 = vpop.f32.mrb[6].mxu1 }
 0x2d8   : > { %v1714_v59 = vpop.f32.mrb[7].mxu1  ;;  %v613_v60 = vsel %vm594_vm1, %v592_v55, 0.0  ;;  %v593_v61 = vand.u32 2147483647, %v1712_v58 }
 0x2d9   : > { %614 = vadd.xlane.f32.xlu1 %v613_v60  ;;  %v607_v62 = vsel %vm594_vm1, %v590_v57, 0.0  ;;  %v591_v63 = vand.u32 2147483647, %v1714_v59  ;;  %v657_v57 = vld [vmem:[%s1737_s23 + $0x30] sm:$0xff]  ;;  %v658_v60 = vld [vmem:[%s1737_s23 + $0x38] sm:$0xff] }
 0x2da   : > { %608 = vadd.xlane.f32.xlu0 %v607_v62  ;;  %v616_v0 = vsel %vm594_vm1, %v593_v61, 0.0 }
 0x2db   : > { %v610_v1 = vsel %vm594_vm1, %v591_v63, 0.0 }
 0x2de   : > { %617 = vadd.xlane.f32.xlu0 %v616_v0 }
 0x2e2   : > { %611 = vadd.xlane.f32.xlu0 %v610_v1 }
 0x2ea   : > { %675 = vrot.lane.b32.xlu1 %v482_v31, %s1426_s9 }
 0x2ee   : > { %677 = vrot.lane.b32.xlu1 %v483_v32, %s1426_s9 }
 0x2f2   : > { %848 = vrot.lane.b32.xlu1 %v1649_v17, %s1427_s17 }
 0x2f6   : > { %852 = vrot.lane.b32.xlu1 %v1657_v21, %s1427_s17 }
 0x2f8   : > { %673 = vrot.lane.b32.xlu0 %v1662_v24, %s1426_s9 }
 0x2fa   : > { %854 = vrot.lane.b32.xlu1 %v1653_v19, %s1427_s17 }
 0x2fc   : > { %850 = vrot.lane.b32.xlu0 %v1651_v18, %s1427_s17 }
 0x35e   : > { %v603_v2 = vpop.xlane.xlu1 %602 }
 0x35f   : > { %v621_v3 = vmax.f32 %v603_v2, 1.0  ;;  %v597_v4 = vpop.xlane.xlu0 %596  ;;  %v656_v2 = vld [vmem:[%s1737_s23 + $0x28] sm:$0xff] }
 0x360   : > { %v619_v5 = vmax.f32 %v597_v4, 1.0 }
 0x361   : > { %v629_v6 = vmin.f32 %v621_v3, 50000.0 }
 0x362   : > { %v627_v7 = vmin.f32 %v619_v5, 50000.0  ;;  %v600_v8 = vpop.xlane.xlu1 %599 }
 0x363   : > { %1258 = vrcp.f32 %v629_v6  ;;  %v620_v9 = vmax.f32 %v600_v8, 1.0  ;;  %v606_v10 = vpop.xlane.xlu0 %605 }
 0x364   : > { %1260 = vrcp.f32 %v627_v7  ;;  %v622_v11 = vmax.f32 %v606_v10, 1.0 }
 0x365   : > { %v628_v12 = vmin.f32 %v620_v9, 50000.0 }
 0x366   : > { %v630_v13 = vmin.f32 %v622_v11, 50000.0  ;;  %v615_v14 = vpop.xlane.xlu1 %614 }
 0x367   : > { %1262 = vrcp.f32 %v628_v12  ;;  %v625_v15 = vmax.f32 %v615_v14, 1.0  ;;  %v609_v16 = vpop.xlane.xlu0 %608 }
 0x368   : > { %1264 = vrcp.f32 %v630_v13  ;;  %v623_v17 = vmax.f32 %v609_v16, 1.0 }
 0x369   : > { %v633_v18 = vmin.f32 %v625_v15, 50000.0 }
 0x36a   : > { %v631_v19 = vmin.f32 %v623_v17, 50000.0  ;;  %v676_v43 = vpop.permute.xlu1 %675 }
 0x36b   : > { %v618_v20 = vpop.xlane.xlu0 %617  ;;  %1266 = vrcp.f32 %v633_v18 }
 0x36c   : > { %v626_v21 = vmax.f32 %v618_v20, 1.0  ;;  %1268 = vrcp.f32 %v631_v19 }
 0x36d   : > { %v1259_v22 = vpop.eup %1258 }
 0x36e   : > { %v1261_v23 = vpop.eup %1260  ;;  %v634_v24 = vmin.f32 %v626_v21, 50000.0  ;;  %v645_v33 = vmul.f32 %v1259_v22, %v1690_v42  ;;  %v678_v54 = vpop.permute.xlu1 %677 }
 0x36f   : > { %v612_v26 = vpop.xlane.xlu0 %611  ;;  %v643_v31 = vmul.f32 %v1261_v23, %v1693_v44 }
 0x370   : > { %1270 = vrcp.f32 %v634_v24  ;;  %v624_v27 = vmax.f32 %v612_v26, 1.0  ;;  %v661_v48 = vadd.f32 %v653_v37, %v645_v33 }
 0x371   : > { %v1263_v32 = vpop.eup %1262  ;;  %v659_v42 = vadd.f32 %v651_v34, %v643_v31 }
 0x372   : > { %v1265_v36 = vpop.eup %1264  ;;  %v632_v39 = vmin.f32 %v624_v27, 50000.0  ;;  %v644_v40 = vmul.f32 %v1263_v32, %v1698_v47  ;;  %v849_v33 = vpop.permute.xlu1 %848 }
 0x373   : > { %v646_v41 = vmul.f32 %v1265_v36, %v1696_v46  ;;  %v674_v44 = vpop.permute.xlu0 %673 }
 0x374   : > { %1272 = vrcp.f32 %v632_v39  ;;  %1158 = vmatprep.subr.bf16.mxu0 %v674_v44  ;;  %1173 = vmatprep.subr.bf16.mxu1 %v674_v44  ;;  %v660_v45 = vadd.f32 %v652_v35, %v644_v40 }
 0x375   : > { %v662_v49 = vadd.f32 %v654_v38, %v646_v41  ;;  %1159 = vmatpush3.bf16.msra.mxu0 %v674_v44  ;;  %1177 = vmatpush3.bf16.msra.mxu1 %v674_v44  ;;  %v1267_v50 = vpop.eup %1266 }
 0x376   : > { %1160 = vmatprep.subr.bf16.mxu0 %v676_v43  ;;  %1174 = vmatprep.subr.bf16.mxu1 %v676_v43  ;;  %v667_v51 = vpack.c.bf16 %v660_v45, %v659_v42  ;;  %v1269_v46 = vpop.eup %1268  ;;  %v649_v52 = vmul.f32 %v1267_v50, %v1705_v53  ;;  %v655_v53 = vld [vmem:[%s1737_s23 + $0x20] sm:$0xff]  ;;  %v853_v34 = vpop.permute.xlu1 %852 }
 0x377   : > { %v668_v47 = vpack.c.bf16 %v662_v49, %v661_v48  ;;  %v647_v0 = vmul.f32 %v1269_v46, %v1709_v56  ;;  %v851_v35 = vpop.permute.xlu0 %850 }
 0x378   : > { %1164 = vmatprep.mubr.msk.bf16.mxu0 %vm594_vm1, %v667_v51  ;;  %v665_v62 = vadd.f32 %v657_v57, %v649_v52 }
 0x379   : > { %1161 = vmatpush3.bf16.msra.mxu0 %v676_v43  ;;  %1178 = vmatpush3.bf16.msra.mxu1 %v676_v43  ;;  %v663_v5 = vadd.f32 %v655_v53, %v647_v0 }
 0x37a   : > { %v1271_v55 = vpop.eup %1270  ;;  %1162 = vmatprep.subr.bf16.mxu0 %v678_v54  ;;  %1175 = vmatprep.subr.bf16.mxu1 %v678_v54  ;;  %v1805_v36 = vpop.permute.xlu1 %854 }
 0x37b   : > { %v650_v61 = vmul.f32 %v1271_v55, %v1712_v58  ;;  %v1066_v55 = vld [vmem:[%s1858_s4] ss:$0 sm:$0xff] }
 0x37d   : > { %v666_v63 = vadd.f32 %v658_v60, %v650_v61  ;;  %1163 = vmatpush3.bf16.msra.mxu0 %v678_v54  ;;  %1179 = vmatpush3.bf16.msra.mxu1 %v678_v54 }
 0x37e   : > { %v1273_v1 = vpop.eup %1272 }
 0x37f   : > { %v670_v3 = vpack.c.bf16 %v666_v63, %v665_v62  ;;  %v648_v4 = vmul.f32 %v1273_v1, %v1714_v59 }
 0x380   : > { %1165 = vmatmul.mubr.msk.bf16.vlgmr.msra.gmra.mrb[8].mxu0 %vm594_vm1, %v668_v47 }
 0x381   : > { %v664_v6 = vadd.f32 %v656_v2, %v648_v4 }
 0x383   : > { %v669_v7 = vpack.c.bf16 %v664_v6, %v663_v5 }
 0x385   : > { %1168 = vmatprep.mubr.msk.bf16.mxu1 %vm594_vm1, %v669_v7 }
 0x386   : > { %1169 = vmatmul.mubr.msk.bf16.vlgmr.msra.gmra.mrb[8].mxu1 %vm594_vm1, %v670_v3 }
 0x453   : > { %v1757_v58 = vpop.f32.mrb[8].mxu0 }
 0x454   : > { %v762_v56 = vmul.f32 %v1757_v58, %v1757_v58  ;;  %v1761_v8 = vpop.f32.mrb[9].mxu0 }
 0x455   : > { %v1763_v9 = vpop.f32.mrb[10].mxu0  ;;  %v760_v59 = vmul.f32 %v1761_v8, %v1761_v8 }
 0x456   : > { %v1767_v10 = vpop.f32.mrb[11].mxu0  ;;  %v774_v11 = vsel %vm496_vm0, %v762_v56, 0.0  ;;  %v763_v15 = vmul.f32 %v1763_v9, %v1763_v9 }
 0x457   : > { %v761_v12 = vmul.f32 %v1767_v10, %v1767_v10  ;;  %775 = vadd.xlane.f32.xlu0 %v774_v11  ;;  %v768_v18 = vsel %vm496_vm0, %v760_v59, 0.0 }
 0x458   : > { %v777_v24 = vsel %vm496_vm0, %v763_v15, 0.0 }
 0x459   : > { %v1772_v13 = vpop.f32.mrb[8].mxu1  ;;  %v771_v14 = vsel %vm496_vm0, %v761_v12, 0.0 }
 0x45a   : > { %v766_v16 = vmul.f32 %v1772_v13, %v1772_v13  ;;  %v1779_v17 = vpop.f32.mrb[9].mxu1  ;;  %772 = vadd.xlane.f32.xlu1 %v771_v14 }
 0x45b   : > { %v1782_v19 = vpop.f32.mrb[10].mxu1  ;;  %769 = vadd.xlane.f32.xlu0 %v768_v18  ;;  %v764_v22 = vmul.f32 %v1779_v17, %v1779_v17 }
 0x45c   : > { %v1784_v20 = vpop.f32.mrb[11].mxu1  ;;  %v786_v21 = vsel %vm496_vm0, %v766_v16, 0.0  ;;  %v767_v23 = vmul.f32 %v1782_v19, %v1782_v19 }
 0x45d   : > { %v780_v26 = vsel %vm496_vm0, %v764_v22, 0.0  ;;  %v765_v27 = vmul.f32 %v1784_v20, %v1784_v20 }
 0x45e   : > { %787 = vadd.xlane.f32.xlu1 %v786_v21  ;;  %v789_v31 = vsel %vm496_vm0, %v767_v23, 0.0 }
 0x45f   : > { %778 = vadd.xlane.f32.xlu0 %v777_v24  ;;  %v783_v32 = vsel %vm496_vm0, %v765_v27, 0.0 }
 0x462   : > { %781 = vadd.xlane.f32.xlu1 %v780_v26 }
 0x463   : > { %790 = vadd.xlane.f32.xlu0 %v789_v31 }
 0x467   : > { %784 = vadd.xlane.f32.xlu0 %v783_v32 }
 0x473   : > { %858 = vrot.lane.b32.xlu1 %v1670_v30, %s1427_s17 }
 0x477   : > { %862 = vrot.lane.b32.xlu1 %v1668_v29, %s1427_s17 }
 0x47d   : > { %856 = vrot.lane.b32.xlu0 %v1664_v25, %s1427_s17 }
 0x481   : > { %860 = vrot.lane.b32.xlu0 %v1666_v28, %s1427_s17 }
 0x4e4   : > { %v776_v37 = vpop.xlane.xlu0 %775 }
 0x4e5   : > { %v795_v38 = vmul.f32 0.03125, %v776_v37 }
 0x4e7   : > { %v803_v39 = vadd.f32 1e-05, %v795_v38  ;;  %v773_v40 = vpop.xlane.xlu1 %772 }
 0x4e8   : > { %v794_v41 = vmul.f32 0.03125, %v773_v40  ;;  %v770_v30 = vpop.xlane.xlu0 %769 }
 0x4e9   : > { %1274 = vrsqrt.f32 %v803_v39  ;;  %v793_v43 = vmul.f32 0.03125, %v770_v30 }
 0x4ea   : > { %v802_v29 = vadd.f32 1e-05, %v794_v41 }
 0x4eb   : > { %v801_v44 = vadd.f32 1e-05, %v793_v43  ;;  %v788_v42 = vpop.xlane.xlu1 %787 }
 0x4ec   : > { %1276 = vrsqrt.f32 %v802_v29  ;;  %v799_v25 = vmul.f32 0.03125, %v788_v42  ;;  %v779_v45 = vpop.xlane.xlu0 %778 }
 0x4ed   : > { %1278 = vrsqrt.f32 %v801_v44  ;;  %v796_v28 = vmul.f32 0.03125, %v779_v45 }
 0x4ee   : > { %v807_v48 = vadd.f32 1e-05, %v799_v25 }
 0x4ef   : > { %v804_v49 = vadd.f32 1e-05, %v796_v28  ;;  %v782_v50 = vpop.xlane.xlu1 %781 }
 0x4f0   : > { %1280 = vrsqrt.f32 %v807_v48  ;;  %v797_v51 = vmul.f32 0.03125, %v782_v50  ;;  %v791_v47 = vpop.xlane.xlu0 %790 }
 0x4f1   : > { %1282 = vrsqrt.f32 %v804_v49  ;;  %v800_v46 = vmul.f32 0.03125, %v791_v47 }
 0x4f2   : > { %v805_v52 = vadd.f32 1e-05, %v797_v51 }
 0x4f3   : > { %v1275_v54 = vpop.eup %1274  ;;  %v808_v57 = vadd.f32 1e-05, %v800_v46  ;;  %v859_v15 = vpop.permute.xlu1 %858 }
 0x4f4   : > { %v819_v60 = vmul.f32 %v1275_v54, %v1757_v58  ;;  %1284 = vrsqrt.f32 %v805_v52  ;;  %v785_v61 = vpop.xlane.xlu0 %784 }
 0x4f5   : > { %1286 = vrsqrt.f32 %v808_v57  ;;  %v798_v62 = vmul.f32 0.03125, %v785_v61 }
 0x4f6   : > { %v1277_v63 = vpop.eup %1276  ;;  %v834_v0 = vmul.f32 %v1066_v55, %v819_v60 }
 0x4f7   : > { %v1279_v1 = vpop.eup %1278  ;;  %v818_v53 = vmul.f32 %v1277_v63, %v1767_v10  ;;  %v806_v2 = vadd.f32 1e-05, %v798_v62  ;;  %v863_v37 = vpop.permute.xlu1 %862 }
 0x4f8   : > { %v874_v3 = vmul.f32 %v853_v34, %v834_v0  ;;  %v817_v4 = vmul.f32 %v1279_v1, %v1761_v8  ;;  %v857_v5 = vpop.permute.xlu0 %856 }
 0x4f9   : > { %v833_v6 = vmul.f32 %v1066_v55, %v818_v53  ;;  %1288 = vrsqrt.f32 %v806_v2 }
 0x4fa   : > { %v1281_v7 = vpop.eup %1280  ;;  %v1082_v58 = vpack.c.bf16 %v874_v3, %v874_v3  ;;  %v832_v56 = vmul.f32 %v1066_v55, %v817_v4 }
 0x4fb   : > { %v1283_v59 = vpop.eup %1282  ;;  %v873_v10 = vmul.f32 %v851_v35, %v833_v6  ;;  %v823_v11 = vmul.f32 %v1281_v7, %v1772_v13 }
 0x4fc   : > { %915 = vst.msk [vmem:[%s1817_s13 + $0x8] sm:$0xf] %vm912_vm2, %v1082_v58  ;;  %v872_v8 = vmul.f32 %v849_v33, %v832_v56  ;;  %v820_v12 = vmul.f32 %v1283_v59, %v1763_v9  ;;  %v861_v23 = vpop.permute.xlu0 %860 }
 0x4fd   : > { %v1081_v14 = vpack.c.bf16 %v873_v10, %v873_v10  ;;  %v838_v16 = vmul.f32 %v1066_v55, %v823_v11 }
 0x4fe   : > { %v1285_v18 = vpop.eup %1284  ;;  %v1080_v21 = vpack.c.bf16 %v872_v8, %v872_v8  ;;  %v835_v22 = vmul.f32 %v1066_v55, %v820_v12 }
 0x4ff   : > { %v1287_v24 = vpop.eup %1286  ;;  %914 = vst.msk [vmem:[%s1817_s13 + $0x4] sm:$0xf] %vm912_vm2, %v1081_v14  ;;  %v821_v26 = vmul.f32 %v1285_v18, %v1779_v17  ;;  %v878_v13 = vmul.f32 %v861_v23, %v838_v16 }
 0x500   : > { %913 = vst.msk [vmem:[%s1817_s13] sm:$0xf] %vm912_vm2, %v1080_v21  ;;  %v875_v27 = vmul.f32 %v1805_v36, %v835_v22  ;;  %v824_v9 = vmul.f32 %v1287_v24, %v1782_v19 }
 0x501   : > { %v836_v31 = vmul.f32 %v1066_v55, %v821_v26  ;;  %v1086_v32 = vpack.c.bf16 %v878_v13, %v878_v13 }
 0x502   : > { %v1083_v33 = vpack.c.bf16 %v875_v27, %v875_v27  ;;  %v839_v34 = vmul.f32 %v1066_v55, %v824_v9 }
 0x503   : > { %v1289_v35 = vpop.eup %1288  ;;  %v876_v38 = vmul.f32 %v857_v5, %v836_v31  ;;  %919 = vst.msk [vmem:[%s1817_s13 + $0x18] sm:$0xf] %vm912_vm2, %v1086_v32 }
 0x504   : > { %916 = vst.msk [vmem:[%s1817_s13 + $0xc] sm:$0xf] %vm912_vm2, %v1083_v33  ;;  %v822_v17 = vmul.f32 %v1289_v35, %v1784_v20  ;;  %v879_v39 = vmul.f32 %v863_v37, %v839_v34 }
 0x505   : > { %v1084_v36 = vpack.c.bf16 %v876_v38, %v876_v38 }
 0x506   : > { %v837_v40 = vmul.f32 %v1066_v55, %v822_v17  ;;  %v1087_v41 = vpack.c.bf16 %v879_v39, %v879_v39 }
 0x507   : > { %917 = vst.msk [vmem:[%s1817_s13 + $0x10] sm:$0xf] %vm912_vm2, %v1084_v36 }
 0x508   : > { %v877_v19 = vmul.f32 %v859_v15, %v837_v40  ;;  %920 = vst.msk [vmem:[%s1817_s13 + $0x1c] sm:$0xf] %vm912_vm2, %v1087_v41 }
 0x50a   : > { %v1085_v30 = vpack.c.bf16 %v877_v19, %v877_v19 }
 0x50c   : > { %918 = vst.msk [vmem:[%s1817_s13 + $0x14] sm:$0xf] %vm912_vm2, %v1085_v30 }
 0x50d PF: > { %p16_p13 = scmp.ge.s32.totalorder %s1479_s22, 6   ;;  %s1873_s18 = smov %s1408_s19 }
 0x50e   : > { %s1874_s19 = smov %s1412_s20  ;;  %s1875_s20 = smov %s1488_s25 }
 0x50f   : > { %s1876_s21 = smov %s1479_s22  ;;  %18 = sbr.rel (!%p16_p13) target bundleno = 4 (0x4), region = 99 }
 0x516   :  { %942 = vsyncpa [#allocation3], 1 }
 0x517   :  { %944 = vsyncpa [#allocation3 + $0x1], 1 }
 0x518   :  { %945 = vsyncpa [#allocation5], 1 }
 0x519   :  { %947 = vsyncpa [#allocation5 + $0x1], 1 }

</bundles_post_ra>
